<compile_context>
chip_gen: v5e
topology: v5e:2x2
jax: 0.10.0
libtpu: 0.0.40
codegen_flags: <defaults>
</compile_context>

<pallas_src>
import functools

import jax
import jax.numpy as jnp
from jax.experimental import pallas as pl
from jax.experimental.pallas import tpu as pltpu


def _mix32(x):
    # lowbias32-style finalizer on uint32 (counter-based dropout RNG).
    x = x ^ (x >> 16)
    x = x * jnp.uint32(0x7FEB352D)
    x = x ^ (x >> 15)
    x = x * jnp.uint32(0x846CA68B)
    x = x ^ (x >> 16)
    return x


def _ffn_kernel(seed_ref, x_ref, w1_ref, b1_ref, w2_ref, b2_ref, o_ref, h_ref,
                *, dropout_p, training, compute_dtype):
    # fcl1 + ReLU: bf16 MXU matmul, f32 accumulation; hidden lives in VMEM scratch.
    x = x_ref[...].astype(compute_dtype)
    h = jnp.dot(x, w1_ref[...], preferred_element_type=jnp.float32) + b1_ref[...]
    h_ref[...] = jnp.maximum(h, 0.0)

    # fcl2 + ReLU
    y = jnp.dot(h_ref[...].astype(compute_dtype), w2_ref[...],
                preferred_element_type=jnp.float32) + b2_ref[...]
    y = jnp.maximum(y, 0.0)

    if training and dropout_p > 0.0:
        tm, e = y.shape
        # Per-element counter unique across the whole (M, E) output: row-tile offset
        # comes from the grid position, so masks never repeat across tiles.
        row0 = pl.program_id(0) * tm
        rows = (jax.lax.broadcasted_iota(jnp.int32, (tm, e), 0) + row0).astype(jnp.uint32)
        cols = jax.lax.broadcasted_iota(jnp.int32, (tm, e), 1).astype(jnp.uint32)
        idx = rows * jnp.uint32(e) + cols
        seed = seed_ref[0].astype(jnp.uint32) * jnp.uint32(0x9E3779B9)
        bits = _mix32(idx ^ seed)
        threshold = jnp.uint32(min(2 ** 32 - 1, int(round(dropout_p * 2.0 ** 32))))
        scale = jnp.float32(1.0 / (1.0 - dropout_p))
        y = jnp.where(bits >= threshold, y * scale, 0.0)

    o_ref[...] = y.astype(o_ref.dtype)


def feedforward(x, w1, b1, w2, b2, *, seed=0, dropout_p=0.1, training=True,
                compute_dtype=jnp.bfloat16, block_rows=256):
    """x: (B, T, E) float32. w1: (E, 2E), b1: (2E,), w2: (2E, E), b2: (E,)."""
    B, T, E = x.shape
    H = w1.shape[1]
    M = B * T
    x2 = x.reshape(M, E)

    # Row tiling: full-M block when small (block == full dim, so the (8,128) rule
    # doesn't apply); otherwise a multiple-of-8 tile so the grid pipelines x/out DMA
    # against the two matmuls.
    TM = M if M <= block_rows else block_rows
    grid = (pl.cdiv(M, TM),)

    # Weights resident in VMEM in compute dtype (bf16 halves weight DMA + residency).
    # TODO(synk): for very large E/H (weights > VMEM budget, esp. v7x 64 MiB) add an
    # H-tiled path with a pl.when-initialized f32 accumulator.
    w1c = w1.astype(compute_dtype)
    w2c = w2.astype(compute_dtype)
    b1r = b1.reshape(1, H).astype(jnp.float32)
    b2r = b2.reshape(1, E).astype(jnp.float32)

    kernel = functools.partial(_ffn_kernel, dropout_p=float(dropout_p),
                               training=bool(training), compute_dtype=compute_dtype)

    flops = 2 * M * E * H + 2 * M * H * E
    bytes_accessed = (x2.size * x2.dtype.itemsize
                      + w1c.size * w1c.dtype.itemsize
                      + w2c.size * w2c.dtype.itemsize
                      + b1r.size * 4 + b2r.size * 4
                      + M * E * x.dtype.itemsize)

    out = pl.pallas_call(
        kernel,
        out_shape=jax.ShapeDtypeStruct((M, E), x.dtype),
        grid_spec=pltpu.PrefetchScalarGridSpec(
            num_scalar_prefetch=1,          # dropout seed lives in SMEM
            grid=grid,
            in_specs=[
                pl.BlockSpec((TM, E), lambda i, seed: (i, 0)),   # x row tile
                pl.BlockSpec((E, H), lambda i, seed: (0, 0)),    # W1 (resident)
                pl.BlockSpec((1, H), lambda i, seed: (0, 0)),    # b1
                pl.BlockSpec((H, E), lambda i, seed: (0, 0)),    # W2 (resident)
                pl.BlockSpec((1, E), lambda i, seed: (0, 0)),    # b2
            ],
            out_specs=pl.BlockSpec((TM, E), lambda i, seed: (i, 0)),
            scratch_shapes=[pltpu.VMEM((TM, H), jnp.float32)],   # hidden activation
        ),
        compiler_params=pltpu.CompilerParams(
            dimension_semantics=("parallel",),      # rows independent -> megacore OK
            vmem_limit_bytes=64 * 1024 * 1024,
        ),
        cost_estimate=pl.CostEstimate(flops=flops, transcendentals=0,
                                      bytes_accessed=bytes_accessed),
    )(jnp.array([seed], dtype=jnp.int32), x2, w1c, b1r, w2c, b2r)

    return out.reshape(B, T, E)


def _init_params(key, n_embedding):
    # Deterministic init mimicking nn.Linear's U(-1/sqrt(fan_in), 1/sqrt(fan_in)).
    k1, k2, k3, k4 = jax.random.split(key, 4)
    e, h = n_embedding, 2 * n_embedding
    lim1 = 1.0 / jnp.sqrt(e)
    lim2 = 1.0 / jnp.sqrt(h)
    w1 = jax.random.uniform(k1, (e, h), jnp.float32, -lim1, lim1)   # (in, out)
    b1 = jax.random.uniform(k2, (h,), jnp.float32, -lim1, lim1)
    w2 = jax.random.uniform(k3, (h, e), jnp.float32, -lim2, lim2)   # (in, out)
    b2 = jax.random.uniform(k4, (e,), jnp.float32, -lim2, lim2)
    return w1, b1, w2, b2


if __name__ == "__main__":
    n_embedding = 32
    B, T = 2, 8

    key = jax.random.PRNGKey(0)
    kx, kp = jax.random.split(key)
    x = jax.random.normal(kx, (B, T, n_embedding), dtype=jnp.float32)
    w1, b1, w2, b2 = _init_params(kp, n_embedding)

    # Correctness check in eval mode (dropout = identity) against a pure-JAX f32
    # reference; loose tolerance because the kernel does the matmuls in bf16.
    y_eval = feedforward(x, w1, b1, w2, b2, training=False)
    ref = jnp.maximum(jnp.maximum(x @ w1 + b1, 0.0) @ w2 + b2, 0.0)
    assert jnp.allclose(y_eval, ref, atol=5e-2, rtol=5e-2), "eval-mode mismatch"

    # Training mode: inverted dropout applied in-kernel (counter-based hash RNG).
    y_train = feedforward(x, w1, b1, w2, b2, seed=0, training=True)
    jax.block_until_ready(y_train)
    assert y_train.shape == (B, T, n_embedding)
    assert bool(jnp.all(jnp.isfinite(y_train)))

    print("KERNEL_OK")
</pallas_src>

<mosaic_0001>
module attributes {stable_mosaic.version = 11 : i64} {
  func.func @_ffn_kernel(%arg0: i32, %arg1: memref<1xi32, #tpu.memory_space<smem>>, %arg2: memref<16x32xf32, #tpu.memory_space<vmem>>, %arg3: memref<32x64xbf16, #tpu.memory_space<vmem>>, %arg4: memref<1x64xf32, #tpu.memory_space<vmem>>, %arg5: memref<64x32xbf16, #tpu.memory_space<vmem>>, %arg6: memref<1x32xf32, #tpu.memory_space<vmem>>, %arg7: memref<16x32xf32, #tpu.memory_space<vmem>>, %arg8: memref<16x64xf32, #tpu.memory_space<vmem>>) attributes {dimension_semantics = [#tpu.dimension_semantics<parallel>], iteration_bounds = array<i64: 1>, scalar_prefetch = 1 : i64, scratch_operands = 1 : i64, tpu.core_type = #tpu.core_type<tc>, window_params = [{transform_indices = @transform_0, window_bounds = array<i64: 16, 32>}, {pipeline_mode = #tpu.pipeline_mode<synchronous>, transform_indices = @transform_1, window_bounds = array<i64: 32, 64>}, {pipeline_mode = #tpu.pipeline_mode<synchronous>, transform_indices = @transform_2, window_bounds = array<i64: 1, 64>}, {pipeline_mode = #tpu.pipeline_mode<synchronous>, transform_indices = @transform_3, window_bounds = array<i64: 64, 32>}, {pipeline_mode = #tpu.pipeline_mode<synchronous>, transform_indices = @transform_4, window_bounds = array<i64: 1, 32>}, {transform_indices = @transform_5, window_bounds = array<i64: 16, 32>}]} {
    %c0 = arith.constant 0 : index
    %c0_0 = arith.constant 0 : index
    %0 = vector.load %arg2[%c0, %c0_0] : memref<16x32xf32, #tpu.memory_space<vmem>>, vector<16x32xf32>
    %1 = arith.truncf %0 : vector<16x32xf32> to vector<16x32xbf16>
    %c0_1 = arith.constant 0 : index
    %c0_2 = arith.constant 0 : index
    %2 = vector.load %arg3[%c0_1, %c0_2] : memref<32x64xbf16, #tpu.memory_space<vmem>>, vector<32x64xbf16>
    %cst = arith.constant dense<0.000000e+00> : vector<16x64xf32>
    %3 = tpu.matmul %1, %2, %cst {dimension_numbers = #tpu.dot_dimension_numbers<[1], [0], [0], [1], [0, 0, 1, 1], [], []>} : vector<16x32xbf16>, vector<32x64xbf16>, vector<16x64xf32> -> vector<16x64xf32>
    %c0_3 = arith.constant 0 : index
    %c0_4 = arith.constant 0 : index
    %4 = vector.load %arg4[%c0_3, %c0_4] : memref<1x64xf32, #tpu.memory_space<vmem>>, vector<1x64xf32>
    %5 = vector.broadcast %4 : vector<1x64xf32> to vector<16x64xf32>
    %6 = arith.addf %3, %5 : vector<16x64xf32>
    %cst_5 = arith.constant 0.000000e+00 : f32
    %7 = vector.broadcast %cst_5 : f32 to vector<16x64xf32>
    %8 = arith.maximumf %6, %7 : vector<16x64xf32>
    %c0_6 = arith.constant 0 : index
    %c0_7 = arith.constant 0 : index
    %9 = vector.load %arg8[%c0_6, %c0_7] : memref<16x64xf32, #tpu.memory_space<vmem>>, vector<16x64xf32>
    tpu.vector_store %arg8[%c0_6, %c0_7], %8 {strides = array<i32>} : memref<16x64xf32, #tpu.memory_space<vmem>>, vector<16x64xf32>,
    %c0_8 = arith.constant 0 : index
    %c0_9 = arith.constant 0 : index
    %10 = vector.load %arg8[%c0_8, %c0_9] : memref<16x64xf32, #tpu.memory_space<vmem>>, vector<16x64xf32>
    %11 = arith.truncf %10 : vector<16x64xf32> to vector<16x64xbf16>
    %c0_10 = arith.constant 0 : index
    %c0_11 = arith.constant 0 : index
    %12 = vector.load %arg5[%c0_10, %c0_11] : memref<64x32xbf16, #tpu.memory_space<vmem>>, vector<64x32xbf16>
    %cst_12 = arith.constant dense<0.000000e+00> : vector<16x32xf32>
    %13 = tpu.matmul %11, %12, %cst_12 {dimension_numbers = #tpu.dot_dimension_numbers<[1], [0], [0], [1], [0, 0, 1, 1], [], []>} : vector<16x64xbf16>, vector<64x32xbf16>, vector<16x32xf32> -> vector<16x32xf32>
    %c0_13 = arith.constant 0 : index
    %c0_14 = arith.constant 0 : index
    %14 = vector.load %arg6[%c0_13, %c0_14] : memref<1x32xf32, #tpu.memory_space<vmem>>, vector<1x32xf32>
    %15 = vector.broadcast %14 : vector<1x32xf32> to vector<16x32xf32>
    %16 = arith.addf %13, %15 : vector<16x32xf32>
    %cst_15 = arith.constant 0.000000e+00 : f32
    %17 = vector.broadcast %cst_15 : f32 to vector<16x32xf32>
    %18 = arith.maximumf %16, %17 : vector<16x32xf32>
    %c0_16 = arith.constant 0 : index
    %c0_17 = arith.constant 0 : index
    %19 = vector.load %arg7[%c0_16, %c0_17] : memref<16x32xf32, #tpu.memory_space<vmem>>, vector<16x32xf32>
    tpu.vector_store %arg7[%c0_16, %c0_17], %18 {strides = array<i32>} : memref<16x32xf32, #tpu.memory_space<vmem>>, vector<16x32xf32>,
    return
  }
  func.func @transform_0(%arg0: i32, %arg1: memref<1xi32, #tpu.memory_space<smem>>) -> (i32, i32) {
    %c0_i32 = arith.constant 0 : i32
    %c0_i32_0 = arith.constant 0 : i32
    return %arg0, %c0_i32 : i32, i32
  }
  func.func @transform_1(%arg0: i32, %arg1: memref<1xi32, #tpu.memory_space<smem>>) -> (i32, i32) {
    %c0_i32 = arith.constant 0 : i32
    %c0_i32_0 = arith.constant 0 : i32
    %c0_i32_1 = arith.constant 0 : i32
    return %c0_i32, %c0_i32_0 : i32, i32
  }
  func.func @transform_2(%arg0: i32, %arg1: memref<1xi32, #tpu.memory_space<smem>>) -> (i32, i32) {
    %c0_i32 = arith.constant 0 : i32
    %c0_i32_0 = arith.constant 0 : i32
    %c0_i32_1 = arith.constant 0 : i32
    return %c0_i32, %c0_i32_0 : i32, i32
  }
  func.func @transform_3(%arg0: i32, %arg1: memref<1xi32, #tpu.memory_space<smem>>) -> (i32, i32) {
    %c0_i32 = arith.constant 0 : i32
    %c0_i32_0 = arith.constant 0 : i32
    %c0_i32_1 = arith.constant 0 : i32
    return %c0_i32, %c0_i32_0 : i32, i32
  }
  func.func @transform_4(%arg0: i32, %arg1: memref<1xi32, #tpu.memory_space<smem>>) -> (i32, i32) {
    %c0_i32 = arith.constant 0 : i32
    %c0_i32_0 = arith.constant 0 : i32
    %c0_i32_1 = arith.constant 0 : i32
    return %c0_i32, %c0_i32_0 : i32, i32
  }
  func.func @transform_5(%arg0: i32, %arg1: memref<1xi32, #tpu.memory_space<smem>>) -> (i32, i32) {
    %c0_i32 = arith.constant 0 : i32
    %c0_i32_0 = arith.constant 0 : i32
    return %arg0, %c0_i32 : i32, i32
  }
}

</mosaic_0001>

<bundles_post_ra>
// kernel: tpu_custom_call.1
= control target key start
LH: loop header
LB: loop body
LE: loop exit
PB: predicated region body
PF: predicated region fallthrough
CT: control target
= control target key end

     0   :  { %s285_s0 = inlined_call_operand.<no memory space> [shape: s32[1], index: 0, kind: input, shape index: {}]   ;;  %s286_s1 = inlined_call_operand.vmem [shape: f32[16,32], index: 1, kind: input, shape index: {}]   ;;  %s287_s2 = inlined_call_operand.vmem [shape: bf16[32,64], index: 2, kind: input, shape index: {}]   ;;  %s288_s3 = inlined_call_operand.vmem [shape: f32[1,64], index: 3, kind: input, shape index: {}]   ;;  %s289_s4 = inlined_call_operand.vmem [shape: bf16[64,32], index: 4, kind: input, shape index: {}]   ;;  %s290_s5 = inlined_call_operand.vmem [shape: f32[1,32], index: 5, kind: input, shape index: {}]   ;;  %s291_s6 = inlined_call_operand.hbm [shape: f32[16,32], index: 6, kind: output, shape index: {}]  }
   0x1   :  { %v175_v0 = vld [vmem:[%s287_s2 + $0x8] sm:$0xff]  ;;  %v174_v1 = vld [vmem:[%s287_s2] sm:$0xff] }
   0x2   :  { %v24_v2 = vld [vmem:[%s286_s1] sm:$0xff]  ;;  %57 = vmatpush.bf16.msra.mxu0 %v175_v0  ;;  %v25_v3 = vld [vmem:[%s286_s1 + $0x8] sm:$0xff] }
   0x3   :  { %12 = vsyncpa [#allocation6], 0  ;;  %v26_v4 = vpack.c.bf16 %v25_v3, %v24_v2  ;;  %vm47_vm0 = vcmask 261120   ;;  %v179_v5 = vld [vmem:[%s289_s4 + $0x18] sm:$0xff]  ;;  %v178_v6 = vld [vmem:[%s289_s4 + $0x10] sm:$0xff]  ;;  %vm67_vm1 = vcmask 523264  }
   0x4   :  { %116 = vmatpush.bf16.msra.mxu1 %v179_v5  ;;  %v177_v7 = vld [vmem:[%s289_s4 + $0x8] sm:$0xff]  ;;  %v176_v8 = vld [vmem:[%s289_s4] sm:$0xff]  ;;  %s136_s16 = sshll.u32 %s291_s6, 4  ;;  %s212_s17 = smov 128   ;;  %s137_s16 = int_to_ptr.hbm [resolvable:$true] %s136_s16 }
   0x5   :  { %v183_v9 = vld [vmem:[%s288_s3] ss:$0 sm:$0xff]  ;;  %s211_s3 = smov [#allocation5]  }
   0x6   :  { %58 = vmatpush.bf16.msra.mxu0 %v174_v1  ;;  %v184_v19 = vld [vmem:[%s290_s5] ss:$0 sm:$0xff]  ;;  %s134_s13 = sshll.u32 %s211_s3, 4  ;;  %s213_s5 = smov 8   ;;  %s135_s13 = int_to_ptr.vmem [resolvable:$true] %s134_s13 }
   0x8   :  { %117 = vmatpush.bf16.msra.mxu1 %v178_v6 }
   0x9   :  { %156 = vmatmul.msk.bf16.vlgmr.msra.gmra.mxu0 %vm47_vm0, %v26_v4 }
   0xc   :  { %118 = vmatpush.bf16.msra.mxu1 %v177_v7 }
  0x10   :  { %119 = vmatpush.bf16.msra.mxu1 %v176_v8 }
  0x86   :  { %v60_v10 = vpop.f32.mrf.mxu0 }
  0x87   :  { %v61_v11 = vadd.f32 %v183_v9, %v60_v10 }
  0x89   :  { %v65_v12 = vmax.f32 %v61_v11, 0.0 }
  0x8b   :  { %68 = vst.msk [vmem:[#allocation2] sm:$0xff] %vm67_vm1, %v65_v12 }
  0x8e   :  { %v62_v13 = vpop.f32.mrf.mxu0 }
  0x8f   :  { %v63_v14 = vadd.f32 %v183_v9, %v62_v13 }
  0x91   :  { %v66_v15 = vmax.f32 %v63_v14, 0.0 }
  0x92   :  { %v70_v16 = vld [vmem:[#allocation2] sm:$0xff] }
  0x93   :  { %69 = vst.msk [vmem:[#allocation2 + $0x8] sm:$0xff] %vm67_vm1, %v66_v15 }
  0x9a   :  { %v71_v17 = vld [vmem:[#allocation2 + $0x8] sm:$0xff] }
  0x9b   :  { %v72_v18 = vpack.c.bf16 %v71_v17, %v70_v16 }
  0x9d   :  { %173 = vmatmul.msk.bf16.vlgmr.msra.gmra.mxu1 %vm67_vm1, %v72_v18 }
 0x11a   :  { %v121_v20 = vpop.f32.mrf.mxu1 }
 0x11b   :  { %v122_v21 = vadd.f32 %v184_v19, %v121_v20 }
 0x11d   :  { %v126_v22 = vmax.f32 %v122_v21, 0.0 }
 0x11f   :  { %128 = vst.msk [vmem:[#allocation5] sm:$0xff] %vm47_vm0, %v126_v22 }
 0x122   :  { %v123_v23 = vpop.f32.mrf.mxu1 }
 0x123   :  { %v124_v24 = vadd.f32 %v184_v19, %v123_v23 }
 0x125   :  { %v127_v25 = vmax.f32 %v124_v24, 0.0 }
 0x127   :  { %129 = vst.msk [vmem:[#allocation5 + $0x8] sm:$0xff] %vm47_vm0, %v127_v25 }
 0x128   :  { %142 = dma.vmem_to_hbm [thread:$0]  %s135_s13, 256, %s137_s16, [#allocation6], %s212_s17, %s212_s17, %s213_s5  }
 0x129   :  { %209 = dma.done.wait [#allocation6], 256  }
 0x12a   :  { %210 = vsyncadd [#allocation6], 4294967040 }
 0x12b   :  { %147 = vsyncpa [#allocation6], 1 }

</bundles_post_ra>
